<compile_context>
chip_gen: v7x
topology: tpu7x:2x2x1
jax: 0.10.0
libtpu: 0.0.40
codegen_flags: <defaults>
</compile_context>

<pallas_src>
import jax
import jax.numpy as jnp
from jax import lax
from jax.experimental import pallas as pl
from jax.experimental.pallas import tpu as pltpu

_INV_SQRT2 = 0.7071067811865476


# ----------------------------------------------------------------------------- kernel


def _make_kernel(compute_dtype, precision, hidden, hidden_chunk):
    """Builds the kernel body. If hidden_chunk is set, the hidden axis is processed in
    static chunks so the live f32 intermediate is (chunk, tile_hw) instead of
    (hidden, tile_hw)."""
    n_chunks = 1 if hidden_chunk is None else hidden // hidden_chunk

    def _gelu_no_half(h):
        # Exact erf GELU with the 0.5 folded into w2 (wrapper pre-scales w2 by 0.5):
        #   GELU(h) = 0.5*h*(1+erf(h/sqrt(2)))  ->  g = h*(1+erf(h/sqrt(2)))
        return h * (1.0 + lax.erf(h * _INV_SQRT2))

    def kernel(x_ref, w1_ref, b1_ref, w2_ref, b2_ref, o_ref):
        # x_ref:  (C, tile_hw)    pixel tile, pixels in lanes
        # w1_ref: (hidden, C)     first 1x1 conv weight (nn.Conv2d layout, squeezed)
        # b1_ref: (hidden, 1)     f32
        # w2_ref: (C, hidden)     second 1x1 conv weight, pre-scaled by 0.5
        # b2_ref: (C, 1)          f32
        # o_ref:  (C, tile_hw)
        x = x_ref[...].astype(compute_dtype)

        if n_chunks == 1:
            h = jnp.dot(w1_ref[...], x,
                        preferred_element_type=jnp.float32, precision=precision)
            h = h + b1_ref[...]
            g = _gelu_no_half(h)
            y = jnp.dot(w2_ref[...], g.astype(compute_dtype),
                        preferred_element_type=jnp.float32, precision=precision)
        else:
            # Static unrolled chunking over hidden: bounds the live f32 intermediate,
            # removes spill traffic, keeps VMEM pressure low (64 MiB on v7x).
            y = jnp.zeros(o_ref.shape, jnp.float32)
            for c in range(n_chunks):
                lo = c * hidden_chunk
                hi = lo + hidden_chunk
                h = jnp.dot(w1_ref[lo:hi, :], x,
                            preferred_element_type=jnp.float32, precision=precision)
                h = h + b1_ref[lo:hi, :]
                g = _gelu_no_half(h)
                y = y + jnp.dot(w2_ref[:, lo:hi], g.astype(compute_dtype),
                                preferred_element_type=jnp.float32, precision=precision)

        y = y + b2_ref[...]
        o_ref[...] = y.astype(o_ref.dtype)

    return kernel


# ----------------------------------------------------------------------- tile sizing


def _round_up(v, m):
    return ((v + m - 1) // m) * m


def _padded_2d_bytes(rows, cols, itemsize):
    # Conservative VMEM layout estimate: sublanes round to 8, lanes round to 128.
    return _round_up(max(rows, 1), 8) * _round_up(max(cols, 1), 128) * itemsize


def _vmem_footprint_bytes(tile_hw, C, h_live, x_item, out_item, const_bytes):
    # Double-buffered x and out tiles + live f32 intermediate (h and g) + resident
    # (double-buffered) weights/biases.
    x_buf = 2 * _padded_2d_bytes(C, tile_hw, x_item)
    o_buf = 2 * _padded_2d_bytes(C, tile_hw, out_item)
    inter = 2 * _padded_2d_bytes(h_live, tile_hw, 4)
    return x_buf + o_buf + inter + 2 * const_bytes


def _pick_tile_hw(HW, C, h_live, x_item, out_item, const_bytes,
                  max_tile=4096, vmem_budget=40 * 1024 * 1024):
    """Largest pixel tile that evenly tiles HW (no ragged/masked last tile), is a
    multiple of 128 (or the full extent), and fits the VMEM budget."""
    candidates = []
    if HW <= max_tile:
        candidates.append(HW)                      # full extent (allowed even if <128)
    t = (min(max_tile, HW) // 128) * 128
    while t >= 128:
        if HW % t == 0:
            candidates.append(t)                   # evenly dividing multiples of 128
        t -= 128
    candidates.append(min(128, HW))                # last-resort fallback
    for tile in candidates:
        if _vmem_footprint_bytes(tile, C, h_live, x_item, out_item, const_bytes) <= vmem_budget:
            return tile
    return candidates[-1]


# -------------------------------------------------------------------------- wrapper


def conv1x1_block(x_nchw, w1, b1, w2, b2, *,
                  use_bf16=True,
                  max_tile_hw=4096,
                  hidden_chunk=None,
                  core_parallel=False,
                  io_buffering=2):
    """Conv1x1Block forward (eval / p=0 dropout).

    x_nchw: (N, C, H, W); w1: (hidden, C); b1: (hidden,); w2: (C, hidden); b2: (C,).
    core_parallel: shard the pixel-tile grid axis across TensorCores (v7x megacore).
    io_buffering:  >2 requests deeper DMA buffering for the x/out tiles.
    """
    N, C, H, W = x_nchw.shape
    hidden = w1.shape[0]
    assert w1.shape == (hidden, C) and w2.shape == (C, hidden)
    assert b1.shape == (hidden,) and b2.shape == (C,)

    HW = H * W
    # (N, C, H, W) -> (N, C, H*W): contiguous reshape, no data movement.
    x3d = x_nchw.reshape(N, C, HW)

    compute_dtype = jnp.bfloat16 if use_bf16 else x_nchw.dtype
    # f32 path must be genuinely f32-faithful on the MXU (multi-pass).
    precision = None if use_bf16 else lax.Precision.HIGHEST

    w1_p = w1.astype(compute_dtype)
    w2_p = (0.5 * w2).astype(compute_dtype)      # fold GELU's 0.5 into the second conv
    b1_p = b1.reshape(hidden, 1).astype(jnp.float32)
    b2_p = b2.reshape(C, 1).astype(jnp.float32)

    # Hidden-axis chunking for large hidden (bounds the live f32 intermediate).
    if hidden_chunk is None and hidden >= 512 and hidden % 128 == 0:
        hidden_chunk = 256 if hidden % 256 == 0 else 128
    if hidden_chunk is not None:
        assert hidden % hidden_chunk == 0, "hidden must be divisible by hidden_chunk"
    h_live = hidden if hidden_chunk is None else hidden_chunk

    const_bytes = (
        _padded_2d_bytes(hidden, C, w1_p.dtype.itemsize)
        + _padded_2d_bytes(C, hidden, w2_p.dtype.itemsize)
        + _padded_2d_bytes(hidden, 1, 4)
        + _padded_2d_bytes(C, 1, 4))

    tile_hw = _pick_tile_hw(HW, C, h_live,
                            x_nchw.dtype.itemsize, x_nchw.dtype.itemsize,
                            const_bytes, max_tile=max_tile_hw)
    grid = (N, pl.cdiv(HW, tile_hw))

    itemsize = x_nchw.dtype.itemsize
    cost = pl.CostEstimate(
        flops=4 * N * HW * C * hidden,                 # two matmuls: 2*M*K*N each
        transcendentals=N * HW * hidden,               # erf on the intermediate
        bytes_accessed=(N * C * HW * itemsize          # x in
                        + N * C * HW * itemsize        # y out
                        + w1_p.size * w1_p.dtype.itemsize
                        + w2_p.size * w2_p.dtype.itemsize
                        + (b1_p.size + b2_p.size) * 4),
    )

    # x / out tile specs (optionally with deeper DMA buffering).
    io_kwargs = {}
    if io_buffering and io_buffering > 2:
        io_kwargs = dict(pipeline_mode=pl.Buffered(io_buffering))
    x_spec = pl.BlockSpec((None, C, tile_hw), lambda n, p: (n, 0, p), **io_kwargs)
    out_spec = pl.BlockSpec((None, C, tile_hw), lambda n, p: (n, 0, p), **io_kwargs)

    # Pixel-tile axis can be sharded across TensorCores on multi-core chips (v7x).
    pixel_sem = pltpu.CORE_PARALLEL if core_parallel else pltpu.PARALLEL

    out3d = pl.pallas_call(
        _make_kernel(compute_dtype, precision, hidden, hidden_chunk),
        out_shape=jax.ShapeDtypeStruct((N, C, HW), x_nchw.dtype),
        grid_spec=pltpu.PrefetchScalarGridSpec(
            num_scalar_prefetch=0,
            grid=grid,
            in_specs=[
                x_spec,                                                     # x tile
                pl.BlockSpec((hidden, C), lambda n, p: (0, 0)),             # w1 (resident)
                pl.BlockSpec((hidden, 1), lambda n, p: (0, 0)),             # b1
                pl.BlockSpec((C, hidden), lambda n, p: (0, 0)),             # 0.5*w2
                pl.BlockSpec((C, 1), lambda n, p: (0, 0)),                  # b2
            ],
            out_specs=out_spec,
        ),
        compiler_params=pltpu.CompilerParams(
            dimension_semantics=(pltpu.PARALLEL, pixel_sem),
            vmem_limit_bytes=48 * 1024 * 1024,   # >= footprint budget, < v7x's 64 MiB
        ),
        cost_estimate=cost,
    )(x3d, w1_p, b1_p, w2_p, b2_p)

    return out3d.reshape(N, C, H, W)


# ------------------------------------------------------------------------ reference


def _reference(x_nchw, w1, b1, w2, b2):
    # Pure-JAX reference of the module's math (1x1 convs as per-pixel linear layers).
    x = x_nchw.astype(jnp.float32)
    h = jnp.einsum("nchw,oc->nohw", x, w1.astype(jnp.float32),
                   precision=lax.Precision.HIGHEST) + b1[None, :, None, None]
    h = 0.5 * h * (1.0 + lax.erf(h * _INV_SQRT2))
    y = jnp.einsum("nchw,oc->nohw", h, w2.astype(jnp.float32),
                   precision=lax.Precision.HIGHEST) + b2[None, :, None, None]
    return y.astype(x_nchw.dtype)


if __name__ == "__main__":
    key = jax.random.PRNGKey(0)

    # --- main demo shapes (match the module's intent: small dim, 1x1 convs) ---
    dim, hidden_dim = 4, 32
    N, H, W = 2, 16, 16

    k_x, k_w1, k_b1, k_w2, k_b2, k2 = jax.random.split(key, 6)
    x = jax.random.normal(k_x, (N, dim, H, W), dtype=jnp.float32)
    w1 = jax.random.normal(k_w1, (hidden_dim, dim), dtype=jnp.float32) * 0.1
    b1 = jax.random.normal(k_b1, (hidden_dim,), dtype=jnp.float32) * 0.1
    w2 = jax.random.normal(k_w2, (dim, hidden_dim), dtype=jnp.float32) * 0.1
    b2 = jax.random.normal(k_b2, (dim,), dtype=jnp.float32) * 0.1

    ref = _reference(x, w1, b1, w2, b2)

    # f32 MXU path (precision=HIGHEST -> faithful to the PyTorch module's f32 math).
    out_f32 = jax.block_until_ready(conv1x1_block(x, w1, b1, w2, b2, use_bf16=False))
    assert out_f32.shape == (N, dim, H, W)
    assert jnp.allclose(out_f32, ref, atol=1e-4, rtol=1e-4), "f32 path mismatch vs reference"

    # bf16 MXU path (default / fast): looser tolerance for bf16 rounding of matmul inputs.
    out_bf16 = jax.block_until_ready(conv1x1_block(x, w1, b1, w2, b2, use_bf16=True))
    assert out_bf16.shape == (N, dim, H, W)
    assert jnp.allclose(out_bf16, ref, atol=3e-2, rtol=3e-2), "bf16 path mismatch vs reference"

    # --- exercise the hidden-chunked path (large-hidden code path) at a small scale ---
    dim2, hid2 = 8, 256
    kx2, kw12, kb12, kw22, kb22 = jax.random.split(k2, 5)
    x2 = jax.random.normal(kx2, (1, dim2, 8, 8), dtype=jnp.float32)
    w12 = jax.random.normal(kw12, (hid2, dim2), dtype=jnp.float32) * 0.05
    b12 = jax.random.normal(kb12, (hid2,), dtype=jnp.float32) * 0.05
    w22 = jax.random.normal(kw22, (dim2, hid2), dtype=jnp.float32) * 0.05
    b22 = jax.random.normal(kb22, (dim2,), dtype=jnp.float32) * 0.05
    ref2 = _reference(x2, w12, b12, w22, b22)
    out2 = jax.block_until_ready(
        conv1x1_block(x2, w12, b12, w22, b22, use_bf16=False, hidden_chunk=128))
    assert jnp.allclose(out2, ref2, atol=1e-4, rtol=1e-4), "chunked path mismatch vs reference"

    print("KERNEL_OK")
</pallas_src>

<mosaic_0001>
module attributes {stable_mosaic.version = 11 : i64} {
  func.func @kernel(%arg0: i32, %arg1: i32, %arg2: memref<1x4x256xf32, #tpu.memory_space<vmem>>, %arg3: memref<32x4xf32, #tpu.memory_space<vmem>>, %arg4: memref<32x1xf32, #tpu.memory_space<vmem>>, %arg5: memref<4x32xf32, #tpu.memory_space<vmem>>, %arg6: memref<4x1xf32, #tpu.memory_space<vmem>>, %arg7: memref<1x4x256xf32, #tpu.memory_space<vmem>>) attributes {dimension_semantics = [#tpu.dimension_semantics<parallel>, #tpu.dimension_semantics<parallel>], iteration_bounds = array<i64: 2, 1>, scalar_prefetch = 0 : i64, scratch_operands = 0 : i64, tpu.core_type = #tpu.core_type<tc>, window_params = [{transform_indices = @transform_0, window_bounds = array<i64: 1, 4, 256>}, {pipeline_mode = #tpu.pipeline_mode<synchronous>, transform_indices = @transform_1, window_bounds = array<i64: 32, 4>}, {pipeline_mode = #tpu.pipeline_mode<synchronous>, transform_indices = @transform_2, window_bounds = array<i64: 32, 1>}, {pipeline_mode = #tpu.pipeline_mode<synchronous>, transform_indices = @transform_3, window_bounds = array<i64: 4, 32>}, {pipeline_mode = #tpu.pipeline_mode<synchronous>, transform_indices = @transform_4, window_bounds = array<i64: 4, 1>}, {transform_indices = @transform_5, window_bounds = array<i64: 1, 4, 256>}]} {
    %c0 = arith.constant 0 : index
    %c0_0 = arith.constant 0 : index
    %c0_1 = arith.constant 0 : index
    %0 = vector.load %arg2[%c0, %c0_0, %c0_1] : memref<1x4x256xf32, #tpu.memory_space<vmem>>, vector<1x4x256xf32>
    %1 = vector.shape_cast %0 : vector<1x4x256xf32> to vector<4x256xf32>
    %c0_2 = arith.constant 0 : index
    %c0_3 = arith.constant 0 : index
    %2 = vector.load %arg3[%c0_2, %c0_3] : memref<32x4xf32, #tpu.memory_space<vmem>>, vector<32x4xf32>
    %cst = arith.constant dense<0.000000e+00> : vector<32x256xf32>
    %3 = tpu.matmul %2, %1, %cst {dimension_numbers = #tpu.dot_dimension_numbers<[1], [0], [0], [1], [0, 0, 1, 1], [], []>, precision = #tpu.contract_precision<fp32>} : vector<32x4xf32>, vector<4x256xf32>, vector<32x256xf32> -> vector<32x256xf32>
    %c0_4 = arith.constant 0 : index
    %c0_5 = arith.constant 0 : index
    %4 = vector.load %arg4[%c0_4, %c0_5] : memref<32x1xf32, #tpu.memory_space<vmem>>, vector<32x1xf32>
    %5 = vector.broadcast %4 : vector<32x1xf32> to vector<32x256xf32>
    %6 = arith.addf %3, %5 : vector<32x256xf32>
    %cst_6 = arith.constant 0.707106769 : f32
    %7 = vector.broadcast %cst_6 : f32 to vector<32x256xf32>
    %8 = arith.mulf %6, %7 : vector<32x256xf32>
    %9 = math.erf %8 : vector<32x256xf32>
    %cst_7 = arith.constant 1.000000e+00 : f32
    %10 = vector.broadcast %cst_7 : f32 to vector<32x256xf32>
    %11 = arith.addf %10, %9 : vector<32x256xf32>
    %12 = arith.mulf %6, %11 : vector<32x256xf32>
    %c0_8 = arith.constant 0 : index
    %c0_9 = arith.constant 0 : index
    %13 = vector.load %arg5[%c0_8, %c0_9] : memref<4x32xf32, #tpu.memory_space<vmem>>, vector<4x32xf32>
    %cst_10 = arith.constant dense<0.000000e+00> : vector<4x256xf32>
    %14 = tpu.matmul %13, %12, %cst_10 {dimension_numbers = #tpu.dot_dimension_numbers<[1], [0], [0], [1], [0, 0, 1, 1], [], []>, precision = #tpu.contract_precision<fp32>} : vector<4x32xf32>, vector<32x256xf32>, vector<4x256xf32> -> vector<4x256xf32>
    %c0_11 = arith.constant 0 : index
    %c0_12 = arith.constant 0 : index
    %15 = vector.load %arg6[%c0_11, %c0_12] : memref<4x1xf32, #tpu.memory_space<vmem>>, vector<4x1xf32>
    %16 = vector.broadcast %15 : vector<4x1xf32> to vector<4x256xf32>
    %17 = arith.addf %14, %16 : vector<4x256xf32>
    %c0_13 = arith.constant 0 : index
    %c0_14 = arith.constant 0 : index
    %c0_15 = arith.constant 0 : index
    %18 = vector.load %arg7[%c0_13, %c0_14, %c0_15] : memref<1x4x256xf32, #tpu.memory_space<vmem>>, vector<1x4x256xf32>
    %19 = vector.shape_cast %18 : vector<1x4x256xf32> to vector<4x256xf32>
    %20 = vector.shape_cast %17 : vector<4x256xf32> to vector<1x4x256xf32>
    tpu.vector_store %arg7[%c0_13, %c0_14, %c0_15], %20 {strides = array<i32>} : memref<1x4x256xf32, #tpu.memory_space<vmem>>, vector<1x4x256xf32>,
    return
  }
  func.func @transform_0(%arg0: i32, %arg1: i32) -> (i32, i32, i32) {
    %c0_i32 = arith.constant 0 : i32
    %c0_i32_0 = arith.constant 0 : i32
    return %arg0, %c0_i32, %arg1 : i32, i32, i32
  }
  func.func @transform_1(%arg0: i32, %arg1: i32) -> (i32, i32) {
    %c0_i32 = arith.constant 0 : i32
    %c0_i32_0 = arith.constant 0 : i32
    %c0_i32_1 = arith.constant 0 : i32
    return %c0_i32, %c0_i32_0 : i32, i32
  }
  func.func @transform_2(%arg0: i32, %arg1: i32) -> (i32, i32) {
    %c0_i32 = arith.constant 0 : i32
    %c0_i32_0 = arith.constant 0 : i32
    %c0_i32_1 = arith.constant 0 : i32
    return %c0_i32, %c0_i32_0 : i32, i32
  }
  func.func @transform_3(%arg0: i32, %arg1: i32) -> (i32, i32) {
    %c0_i32 = arith.constant 0 : i32
    %c0_i32_0 = arith.constant 0 : i32
    %c0_i32_1 = arith.constant 0 : i32
    return %c0_i32, %c0_i32_0 : i32, i32
  }
  func.func @transform_4(%arg0: i32, %arg1: i32) -> (i32, i32) {
    %c0_i32 = arith.constant 0 : i32
    %c0_i32_0 = arith.constant 0 : i32
    %c0_i32_1 = arith.constant 0 : i32
    return %c0_i32, %c0_i32_0 : i32, i32
  }
  func.func @transform_5(%arg0: i32, %arg1: i32) -> (i32, i32, i32) {
    %c0_i32 = arith.constant 0 : i32
    %c0_i32_0 = arith.constant 0 : i32
    return %arg0, %c0_i32, %arg1 : i32, i32, i32
  }
}

</mosaic_0001>

<bundles_post_ra>
// kernel: tpu_custom_call.1
= control target key start
LH: loop header
LB: loop body
LE: loop exit
PB: predicated region body
PF: predicated region fallthrough
CT: control target
= control target key end

     0   :  { %10 = vsyncpa [#allocation3], 0  ;;  %s2184_s0 = inlined_call_operand.vmem [shape: f32[2,4,256], index: 0, kind: input, shape index: {}]   ;;  %s2185_s1 = inlined_call_operand.vmem [shape: f32[32,4], index: 1, kind: input, shape index: {}]   ;;  %s2186_s2 = inlined_call_operand.vmem [shape: f32[32,1], index: 2, kind: input, shape index: {}]   ;;  %s2187_s3 = inlined_call_operand.vmem [shape: f32[4,32], index: 3, kind: input, shape index: {}]   ;;  %s2188_s4 = inlined_call_operand.vmem [shape: f32[4,1], index: 4, kind: input, shape index: {}]   ;;  %s2189_s5 = inlined_call_operand.hbm [shape: f32[2,4,256], index: 5, kind: output, shape index: {}]  }
   0x1   :  { %12 = vsyncpa [#allocation3 + $0x1], 0  ;;  %s1913_s18 = smov 0   ;;  %s1915_s19 = smov 0  }
   0x2   :  { %s1917_s20 = smov 0   ;;  %s1919_s21 = smov 0  }
   0x3   :  { %s1921_s22 = smov 0   ;;  %s1923_s23 = smov 0  }
   0x4 LB: > { %s1599_s24 = sadd.s32 4294967295, %s1878_s23   ;;  %s1600_s25 = sadd.s32 4294967294, %s1878_s23   ;;  %s1878_s23 = sphi %s1923_s23, %s18_s23   ;;  %s1874_s22 = sphi %s1921_s22, %s2196_s22   ;;  %s1870_s21 = sphi %s1919_s21, %s2195_s21   ;;  %s1866_s20 = sphi %s1917_s20, %s2194_s20   ;;  %s1862_s19 = sphi %s1915_s19, %s2193_s19   ;;  %s1858_s18 = sphi %s1913_s18, %s2192_s18  }
   0x5   : > { %s30_s26 = sadd.s32 1, %s1874_s22  ;;  %s151_s27 = sadd.s32 1, %s1866_s20 }
   0x6   : > { %p32_p0 = scmp.ge.s32.totalorder %s30_s26, 2  ;;  %p161_p1 = scmp.ne.s32.totalorder %s1866_s20, %s1862_s19 }
   0x7   : > { %p162_p2 = scmp.eq.s32.totalorder %s1599_s24, 1  ;;  %p167_p3 = scmp.ne.s32.totalorder %s1862_s19, %s1858_s18 }
   0x8   : > { %s2198_s26 = smov (%p32_p0, %s30_s26), 0  ;;  %p168_p5 = scmp.eq.s32.totalorder %s1600_s25, 1 }
   0x9   : > { %p1953_p4 = por %p162_p2, %p161_p1  ;;  %s146_s29 = ssub.s32 %s1874_s22, %s2198_s26 }
   0xa   : > { %p1603_p6 = scmp.ge.s32.totalorder %s1878_s23, 1  ;;  %p149_p7 = scmp.eq.s32.totalorder %s146_s29, 0 }
   0xb   : > { %p1960_p8 = por %p168_p5, %p167_p3  ;;  %p211_p9 = scmp.lt.s32.totalorder %s1878_s23, 3 }
   0xc   : > { %s1966_s6 = scalar_select %p149_p7, %s1866_s20, %s151_s27  }
   0xd   : > { %p212_p10 = pnand %p1603_p6, %p211_p9 }
   0xe   : > { %p244_p11 = scmp.lt.s32.totalorder (!%p212_p10), %s1870_s21, 1  ;;  %v255_v0 = vld [vmem:[%s2185_s1] sm:$0xff] (!%p212_p10)  ;;  %vm285_vm0 = vcmask (!%p212_p10), 31744   ;;  %v256_v1 = vld [vmem:[%s2185_s1 + $0x8] sm:$0xff] (!%p212_p10)  ;;  %v1880_v2 = vmov (!%p212_p10), 0.0   ;;  %v257_v5 = vld [vmem:[%s2185_s1 + $0x10] sm:$0xff] (!%p212_p10) }
   0xf   : > { %215 = sbr.rel (%p212_p10) target bundleno = 621 (0x26d), region = 40  ;;  %488 = vmatprep.mubr.f32.mxu0 (!%p212_p10), %v1880_v2  ;;  %v287_v3 = vsel (!%p212_p10), %vm285_vm0, %v255_v0, 0  ;;  %v290_v4 = vsel (!%p212_p10), %vm285_vm0, %v256_v1, 0  ;;  %369 = vmatprep.mubr.f32.mxu1 (!%p212_p10), %v1880_v2  ;;  %v259_v6 = vld [vmem:[%s2186_s2] sm:$0xff] (!%p212_p10)  ;;  %v293_v9 = vsel (!%p212_p10), %vm285_vm0, %v257_v5, 0  ;;  %v1881_v10 = vmov (!%p212_p10), 0  }
  0x10   : > { %v1986_v7 = vand.u32 (!%p212_p10), 4294901760, %v287_v3  ;;  %v1988_v8 = vand.u32 (!%p212_p10), 4294901760, %v290_v4  ;;  %1781 = vset.pattern.permute.xlu0 (!%p212_p10), %v1881_v10  ;;  %1782 = vset.pattern.permute.xlu1 (!%p212_p10), %v1881_v10  ;;  %v258_v11 = vld [vmem:[%s2185_s1 + $0x18] sm:$0xff] (!%p212_p10)  ;;  %v261_v12 = vld [vmem:[%s2186_s2 + $0x10] sm:$0xff] (!%p212_p10)  ;;  %vm298_vm1 = vcmask (!%p212_p10), 1043456   ;;  %v260_v15 = vld [vmem:[%s2186_s2 + $0x8] sm:$0xff] (!%p212_p10) }
  0x11   : > { %265 = vperm.xlu0 (!%p212_p10), %1781, %v259_v6   ;;  %275 = vperm.xlu1 (!%p212_p10), %1782, %v261_v12   ;;  %v2009_v16 = vand.u32 (!%p212_p10), 4294901760, %v293_v9  ;;  %v262_v17 = vld [vmem:[%s2186_s2 + $0x18] sm:$0xff] (!%p212_p10)  ;;  %v296_v19 = vsel (!%p212_p10), %vm285_vm0, %v258_v11, 0  ;;  %v948_v26 = vld [vmem:[%s2188_s4] sm:$0xf] (!%p212_p10)  ;;  %vm954_vm2 = vcmask (!%p212_p10), 261120  }
  0x12   : > { %v1998_v13 = vsub.f32 (!%p212_p10), %v287_v3, %v1986_v7  ;;  %v2001_v14 = vsub.f32 (!%p212_p10), %v290_v4, %v1988_v8  ;;  %v2030_v29 = vand.u32 (!%p212_p10), 4294901760, %v296_v19  ;;  %s240_s17 = sand.u32 (!%p212_p10), 1, %s1862_s19   ;;  %s1613_s25 = sshll.u32 (!%p212_p10), %s1870_s21, 7 }
  0x13   : > { %v2028_v28 = vsub.f32 (!%p212_p10), %v293_v9, %v2009_v16  ;;  %s1604_s24 = sshll.u32 (!%p212_p10), %s240_s17, 3  ;;  %s2137_s9 = scalar_lea.hbm (!%p212_p10), %s2189_s5, %s1613_s25 }
  0x14   : > { %v372_v20 = vand.u32 (!%p212_p10), 4294901760, %v1998_v13  ;;  %v383_v21 = vand.u32 (!%p212_p10), 4294901760, %v2001_v14  ;;  %v404_v39 = vsub.f32 (!%p212_p10), %v296_v19, %v2030_v29 }
  0x15   : > { %270 = vperm.xlu0 (!%p212_p10), %1781, %v260_v15   ;;  %280 = vperm.xlu1 (!%p212_p10), %1782, %v262_v17   ;;  %v394_v36 = vand.u32 (!%p212_p10), 4294901760, %v2028_v28 }
  0x16   : > { %s245_s15 = scalar_select %p244_p11, %s1870_s21, 1  ;;  %v373_v25 = vsub.f32 %v1998_v13, %v372_v20  ;;  %v384_v33 = vsub.f32 %v2001_v14, %v383_v21  ;;  %v405_v42 = vand.u32 4294901760, %v404_v39 }
  0x17   : > { %v395_v43 = vsub.f32 %v2028_v28, %v394_v36  ;;  %s1882_s21 = smov [#allocation2]  }
  0x18   : > { %s1612_s27 = sshll.u32 %s245_s15, 3  ;;  %v374_v32 = vand.u32 4294901760, %v373_v25  ;;  %v385_v40 = vand.u32 4294901760, %v384_v33  ;;  %v406_v47 = vsub.f32 %v404_v39, %v405_v42  ;;  %s1804_s12 = sshll.u32 %s1882_s21, 4  ;;  %s1805_s12 = int_to_ptr.vmem [resolvable:$false] %s1804_s12 }
  0x19   : > { %s251_s10 = scalar_lea.vmem %s2184_s0, %s1612_s27  ;;  %951 = vperm.xlu0 %1781, %v948_v26   ;;  %v396_v46 = vand.u32 4294901760, %v395_v43  ;;  %s242_s27 = scalar_lea.vmem [#allocation2], %s1604_s24 }
  0x1a   : > { %v254_v18 = vld [vmem:[%s251_s10] sm:$0xff]  ;;  %v407_v48 = vand.u32 4294901760, %v406_v47  ;;  %s1523_s29 = sshll.u32 %s242_s27, 4  ;;  %s1507_s10 = scalar_lea.sflag [#allocation3], %s240_s17  ;;  %s2139_s29 = int_to_ptr.vmem [resolvable:$true] %s1523_s29 }
  0x1b   : > { %v284_v22 = vcombine.high %v254_v18, %v254_v18  ;;  %v299_v23 = vsel %vm298_vm1, %v254_v18, 0  ;;  %s1800_s11 = scalar_lea.vmem %s2139_s29, 128  ;;  %s1806_s13 = scalar_lea.vmem %s1805_s12, 256 }
  0x1c   : > { %v2018_v24 = vand.u32 4294901760, %v299_v23  ;;  %p1801_p12 = scmp.ne.s32.totalorder %s2139_s29, %s1800_s11  ;;  %p1807_p1 = scmp.lt.s32.totalorder %s2139_s29, %s1805_s12 }
  0x1d   : > { %v301_v27 = vsel %vm298_vm1, %v284_v22, 0  ;;  %p1808_p2 = scmp.lt.s32.totalorder %s1806_s13, %s1800_s11 }
  0x1e   : > { %v303_v30 = vand.u32 4294901760, %v301_v27  ;;  %v421_v31 = vsub.f32 %v299_v23, %v2018_v24  ;;  %p1802_p13 = pnand %p1801_p12, %p1953_p4 }
  0x1f   : > { %p1809_p3 = por %p1808_p2, %p1807_p1 }
  0x20   : > { %v415_v34 = vsub.f32 %v301_v27, %v303_v30  ;;  %v422_v35 = vand.u32 4294901760, %v421_v31  ;;  %304 = vmatprep.subr.mxu1 %v303_v30  ;;  %p1803_p0 = pneg %p1802_p13 }
  0x21   : > { %306 = vmatpush1.msra.mxu1 %v2018_v24 }
  0x22   : > { %v416_v37 = vand.u32 4294901760, %v415_v34  ;;  %v423_v38 = vsub.f32 %v421_v31, %v422_v35  ;;  %375 = vmatmul.mubr.f32.vlgmr.msra.gmra.mrb[0].mxu1 %v374_v32  ;;  %p1810_p5 = pnand %p1809_p3, %p1803_p0 }
  0x23   : > { %380 = vmatprep.mubr.f32.mxu1 %v1880_v2 }
  0x24   : > { %v417_v41 = vsub.f32 %v415_v34, %v416_v37  ;;  %v424_v44 = vand.u32 4294901760, %v423_v38 }
  0x26   : > { %v418_v45 = vand.u32 4294901760, %v417_v41  ;;  %386 = vmatmul.mubr.f32.gmra.mrb[2].mxu1 %v385_v40 }
  0x27   : > { %391 = vmatprep.mubr.f32.mxu1 %v1880_v2 }
  0x28   : > { %419 = vmatprep.subr.mxu0 %v418_v45  ;;  %1662 = vmatprep.subr.mxu1 %v418_v45 }
  0x29   : > { %425 = vmatpush1.msra.mxu0 %v424_v44  ;;  %1663 = vmatpush1.msra.mxu1 %v424_v44 }
  0x2a   : > { %490 = vmatmul.mubr.f32.vlgmr.msra.gmra.mrb[0].mxu0 %v1986_v7  ;;  %519 = vmatprep.subr.mxu0 %v415_v34 }
  0x2b   : > { %522 = vmatpush1.msra.mxu0 %v421_v31  ;;  %585 = vmatprep.mubr.f32.mxu0 %v1880_v2 }
  0x2c   : > { %619 = vmatprep.subr.mxu0 %v303_v30  ;;  %397 = vmatmul.mubr.f32.gmra.mrb[4].mxu1 %v396_v46 }
  0x2d   : > { %402 = vmatprep.mubr.f32.mxu1 %v1880_v2 }
  0x30   : > { %408 = vmatmul.mubr.f32.gmra.mrb[6].mxu1 %v407_v48 }
  0x31   : > { %495 = vmatprep.mubr.f32.mxu1 %v1880_v2 }
  0x32   : > { %588 = vmatmul.mubr.f32.vlgmr.msra.gmra.mrb[0].mxu0 %v1998_v13  ;;  %v947_v13 = vld [vmem:[%s2187_s3] sm:$0xf] }
  0x33   : > { %593 = vmatprep.mubr.f32.mxu0 %v1880_v2  ;;  %621 = vmatpush1.msra.mxu0 %v2018_v24 }
  0x34   : > { %724 = vmatprep.subr.mxu0 %v416_v37  ;;  %497 = vmatmul.mubr.f32.vlgmr.msra.gmra.mrb[2].mxu1 %v1988_v8 }
  0x35   : > { %502 = vmatprep.mubr.f32.mxu1 %v1880_v2 }
  0x36   : > { %596 = vmatmul.mubr.f32.gmra.mrb[2].mxu0 %v2001_v14 }
  0x37   : > { %601 = vmatprep.mubr.f32.mxu0 %v1880_v2 }
  0x38   : > { %504 = vmatmul.mubr.f32.gmra.mrb[4].mxu1 %v2009_v16 }
  0x39   : > { %509 = vmatprep.mubr.f32.mxu1 %v1880_v2 }
  0x3a   : > { %604 = vmatmul.mubr.f32.gmra.mrb[4].mxu0 %v2028_v28 }
  0x3b   : > { %609 = vmatprep.mubr.f32.mxu0 %v1880_v2 }
  0x3c   : > { %511 = vmatmul.mubr.f32.gmra.mrb[6].mxu1 %v2030_v29 }
  0x3d   : > { %1030 = vmatprep.mubr.f32.mxu1 %v1880_v2 }
  0x3e   : > { %612 = vmatmul.mubr.f32.gmra.mrb[6].mxu0 %v404_v39 }
  0x3f   : > { %684 = vmatprep.mubr.f32.mxu0 %v1880_v2 }
  0x42   : > { %688 = vmatmul.mubr.f32.vlgmr.msra.gmra.mrb[0].mxu0 %v372_v20 }
  0x43   : > { %693 = vmatprep.mubr.f32.mxu0 %v1880_v2  ;;  %728 = vmatpush1.msra.mxu0 %v422_v35 }
  0x44   : > { %821 = vmatprep.subr.mxu0 %v303_v30 }
  0x46   : > { %697 = vmatmul.mubr.f32.gmra.mrb[2].mxu0 %v383_v21  ;;  %v956_v21 = vsel %vm954_vm2, %v947_v13, 0 }
  0x47   : > { %702 = vmatprep.mubr.f32.mxu0 %v1880_v2 }
  0x4a   : > { %706 = vmatmul.mubr.f32.gmra.mrb[4].mxu0 %v394_v36 }
  0x4b   : > { %711 = vmatprep.mubr.f32.mxu0 %v1880_v2 }
  0x4e   : > { %715 = vmatmul.mubr.f32.gmra.mrb[6].mxu0 %v405_v42 }
  0x4f   : > { %791 = vmatprep.mubr.f32.mxu0 %v1880_v2 }
  0x52   : > { %793 = vmatmul.mubr.f32.vlgmr.msra.gmra.mrb[0].mxu0 %v1986_v7 }
  0x53   : > { %798 = vmatprep.mubr.f32.mxu0 %v1880_v2  ;;  %823 = vmatpush1.msra.mxu0 %v2018_v24 }
  0x56   : > { %800 = vmatmul.mubr.f32.gmra.mrb[2].mxu0 %v1988_v8 }
  0x57   : > { %805 = vmatprep.mubr.f32.mxu0 %v1880_v2 }
  0x5a   : > { %807 = vmatmul.mubr.f32.gmra.mrb[4].mxu0 %v2009_v16 }
  0x5b   : > { %812 = vmatprep.mubr.f32.mxu0 %v1880_v2 }
  0x5e   : > { %814 = vmatmul.mubr.f32.gmra.mrb[6].mxu0 %v2030_v29 }
  0x5f   : > { %886 = vmatprep.mubr.f32.mxu0 %v1880_v2 }
  0x62   : > { %888 = vmatmul.mubr.f32.vlgmr.msra.gmra.mrb[0].mxu0 %v1986_v7 }
  0x63   : > { %893 = vmatprep.mubr.f32.mxu0 %v1880_v2 }
  0x66   : > { %895 = vmatmul.mubr.f32.gmra.mrb[2].mxu0 %v1988_v8 }
  0x67   : > { %900 = vmatprep.mubr.f32.mxu0 %v1880_v2 }
  0x6a   : > { %902 = vmatmul.mubr.f32.gmra.mrb[4].mxu0 %v2009_v16 }
  0x6b   : > { %907 = vmatprep.mubr.f32.mxu0 %v1880_v2 }
  0x6e   : > { %909 = vmatmul.mubr.f32.gmra.mrb[6].mxu0 %v2030_v29  ;;  %v2087_v29 = vand.u32 4294901760, %v956_v21 }
  0x70   : > { %v2090_v37 = vsub.f32 %v956_v21, %v2087_v29 }
  0x72   : > { %v1033_v46 = vand.u32 4294901760, %v2090_v37 }
  0x90   : > { %v266_v57 = vpop.permute.xlu0 %265  ;;  %v276_v0 = vpop.permute.xlu1 %275 }
  0x94   : > { %v271_v60 = vpop.permute.xlu0 %270  ;;  %v281_v15 = vpop.permute.xlu1 %280 }
  0xf5   : > { %v376_v49 = vpop.f32.mrb[0].mxu1 }
  0xf6   : > { %v378_v50 = vpop.f32.mrb[1].mxu1  ;;  %v377_v58 = vadd.f32 %v376_v49, %v266_v57 }
  0xf7   : > { %v379_v59 = vadd.f32 %v378_v50, %v266_v57 }
 0x107   : > { %v498_v51 = vpop.f32.mrb[2].mxu1 }
 0x108   : > { %v500_v52 = vpop.f32.mrb[3].mxu1  ;;  %v1668_v3 = vadd.f32 %v498_v51, %v271_v60 }
 0x109   : > { %v1670_v5 = vadd.f32 %v500_v52, %v271_v60 }
 0x10b   : > { %v505_v53 = vpop.f32.mrb[4].mxu1 }
 0x10c   : > { %v507_v54 = vpop.f32.mrb[5].mxu1  ;;  %v1672_v11 = vadd.f32 %v505_v53, %v276_v0 }
 0x10d   : > { %v1674_v14 = vadd.f32 %v507_v54, %v276_v0 }
 0x10f   : > { %v512_v55 = vpop.f32.mrb[6].mxu1 }
 0x110   : > { %v514_v56 = vpop.f32.mrb[7].mxu1  ;;  %v1676_v22 = vadd.f32 %v512_v55, %v281_v15 }
 0x111   : > { %v1678_v24 = vadd.f32 %v514_v56, %v281_v15 }
 0x135   : > { %v889_v61 = vpop.f32.mrb[0].mxu0 }
 0x136   : > { %v1665_v62 = vadd.f32 %v889_v61, %v377_v58  ;;  %v891_v63 = vpop.f32.mrb[1].mxu0 }
 0x137   : > { %v1667_v1 = vadd.f32 %v891_v63, %v379_v59  ;;  %v1034_v59 = vsub.f32 %v2090_v37, %v1033_v46 }
 0x138   : > { %v915_v4 = vmul.f32 0.70710677, %v1665_v62 }
 0x139   : > { %v916_v6 = vmul.f32 0.70710677, %v1667_v1  ;;  %v896_v7 = vpop.f32.mrb[2].mxu0 }
 0x13a   : > { %1784 = verf.f32 %v915_v4  ;;  %v1669_v8 = vadd.f32 %v1668_v3, %v896_v7  ;;  %v898_v9 = vpop.f32.mrb[3].mxu0 }
 0x13b   : > { %1786 = verf.f32 %v916_v6  ;;  %v1671_v10 = vadd.f32 %v1670_v5, %v898_v9 }
 0x13c   : > { %v917_v12 = vmul.f32 0.70710677, %v1669_v8 }
 0x13d   : > { %v918_v16 = vmul.f32 0.70710677, %v1671_v10  ;;  %v903_v17 = vpop.f32.mrb[4].mxu0 }
 0x13e   : > { %1788 = verf.f32 %v917_v12  ;;  %v1673_v18 = vadd.f32 %v1672_v11, %v903_v17  ;;  %v905_v19 = vpop.f32.mrb[5].mxu0 }
 0x13f   : > { %1790 = verf.f32 %v918_v16  ;;  %v1675_v20 = vadd.f32 %v1674_v14, %v905_v19 }
 0x140   : > { %v919_v23 = vmul.f32 0.70710677, %v1673_v18 }
 0x141   : > { %v920_v25 = vmul.f32 0.70710677, %v1675_v20  ;;  %v910_v26 = vpop.f32.mrb[6].mxu0 }
 0x142   : > { %1792 = verf.f32 %v919_v23  ;;  %v1677_v27 = vadd.f32 %v1676_v22, %v910_v26  ;;  %v912_v28 = vpop.f32.mrb[7].mxu0 }
 0x143   : > { %1794 = verf.f32 %v920_v25  ;;  %v1679_v30 = vadd.f32 %v1678_v24, %v912_v28 }
 0x144   : > { %v1785_v31 = vpop.eup %1784  ;;  %v921_v32 = vmul.f32 0.70710677, %v1677_v27 }
 0x145   : > { %v1787_v33 = vpop.eup %1786  ;;  %v931_v34 = vadd.f32 1.0, %v1785_v31  ;;  %v922_v35 = vmul.f32 0.70710677, %v1679_v30 }
 0x146   : > { %v932_v36 = vadd.f32 1.0, %v1787_v33  ;;  %1796 = verf.f32 %v921_v32 }
 0x147   : > { %v939_v38 = vmul.f32 %v1665_v62, %v931_v34  ;;  %1798 = verf.f32 %v922_v35 }
 0x148   : > { %v1789_v39 = vpop.eup %1788  ;;  %v940_v40 = vmul.f32 %v1667_v1, %v932_v36 }
 0x149   : > { %v1791_v41 = vpop.eup %1790  ;;  %v960_v42 = vand.u32 4294901760, %v939_v38  ;;  %v933_v43 = vadd.f32 1.0, %v1789_v39 }
 0x14a   : > { %v958_v44 = vand.u32 4294901760, %v940_v40  ;;  %v934_v45 = vadd.f32 1.0, %v1791_v41 }
 0x14b   : > { %v2093_v47 = vsub.f32 %v939_v38, %v960_v42  ;;  %v941_v48 = vmul.f32 %v1669_v8, %v933_v43 }
 0x14c   : > { %v1793_v49 = vpop.eup %1792  ;;  %v2095_v50 = vsub.f32 %v940_v40, %v958_v44  ;;  %v942_v51 = vmul.f32 %v1671_v10, %v934_v45 }
 0x14d   : > { %v1795_v52 = vpop.eup %1794  ;;  %v1050_v53 = vand.u32 4294901760, %v2093_v47  ;;  %v964_v54 = vand.u32 4294901760, %v941_v48  ;;  %v935_v55 = vadd.f32 1.0, %v1793_v49 }
 0x14e   : > { %v962_v56 = vand.u32 4294901760, %v942_v51  ;;  %v936_v57 = vadd.f32 1.0, %v1795_v52  ;;  %v1044_v58 = vand.u32 4294901760, %v2095_v50 }
 0x14f   : > { %v1051_v60 = vsub.f32 %v2093_v47, %v1050_v53  ;;  %v2103_v61 = vpack.c.bf16 %v964_v54, %v960_v42  ;;  %v2105_v62 = vsub.f32 %v941_v48, %v964_v54  ;;  %v943_v63 = vmul.f32 %v1673_v18, %v935_v55 }
 0x150   : > { %v1797_v0 = vpop.eup %1796  ;;  %v1055_v1 = vsub.f32 %v942_v51, %v962_v56  ;;  %v944_v3 = vmul.f32 %v1675_v20, %v936_v57  ;;  %v2107_v4 = vpack.c.bf16 %v962_v56, %v958_v44  ;;  %v1045_v5 = vsub.f32 %v2095_v50, %v1044_v58 }
 0x151   : > { %v1799_v6 = vpop.eup %1798  ;;  %v1062_v7 = vand.u32 4294901760, %v2105_v62  ;;  %v968_v8 = vand.u32 4294901760, %v943_v63  ;;  %v937_v9 = vadd.f32 1.0, %v1797_v0  ;;  %v1052_v10 = vand.u32 4294901760, %v1051_v60 }
 0x152   : > { %v966_v11 = vand.u32 4294901760, %v944_v3  ;;  %v938_v12 = vadd.f32 1.0, %v1799_v6  ;;  %1615 = vmatprep.subr.bf16.mxu1 %v2107_v4  ;;  %v1046_v13 = vand.u32 4294901760, %v1045_v5  ;;  %v1056_v14 = vand.u32 4294901760, %v1055_v1 }
 0x153   : > { %v1063_v15 = vsub.f32 %v2105_v62, %v1062_v7  ;;  %v1073_v16 = vsub.f32 %v943_v63, %v968_v8  ;;  %v945_v17 = vmul.f32 %v1677_v27, %v937_v9  ;;  %1617 = vmatpush1.bf16.msra.mxu1 %v2103_v61  ;;  %v1630_v18 = vpack.c.bf16 %v1055_v1, %v2095_v50 }
 0x154   : > { %v1067_v19 = vsub.f32 %v944_v3, %v966_v11  ;;  %v946_v20 = vmul.f32 %v1679_v30, %v938_v12  ;;  %v1057_v21 = vsub.f32 %v1055_v1, %v1056_v14  ;;  %v1632_v22 = vpack.c.bf16 %v2105_v62, %v2093_v47 }
 0x155   : > { %v1074_v23 = vand.u32 4294901760, %v1073_v16  ;;  %v972_v24 = vand.u32 4294901760, %v945_v17  ;;  %v1064_v25 = vand.u32 4294901760, %v1063_v15  ;;  %v1646_v26 = vpack.c.bf16 %v1056_v14, %v1044_v58 }
 0x156   : > { %v970_v28 = vand.u32 4294901760, %v946_v20  ;;  %v1058_v31 = vand.u32 4294901760, %v1057_v21  ;;  %v1068_v32 = vand.u32 4294901760, %v1067_v19  ;;  %v1648_v33 = vpack.c.bf16 %v1062_v7, %v1050_v53 }
 0x157   : > { %v1620_v34 = vpack.c.bf16 %v972_v24, %v968_v8  ;;  %v1085_v27 = vsub.f32 %v945_v17, %v972_v24  ;;  %v1624_v35 = vpack.c.bf16 %v1064_v25, %v1052_v10  ;;  %v1075_v40 = vsub.f32 %v1073_v16, %v1074_v23 }
 0x158   : > { %v1079_v36 = vsub.f32 %v946_v20, %v970_v28  ;;  %v1618_v38 = vpack.c.bf16 %v970_v28, %v966_v11  ;;  %v1622_v39 = vpack.c.bf16 %v1058_v31, %v1046_v13  ;;  %v1035_v42 = vand.u32 4294901760, %v1034_v59 }
 0x159   : > { %v1086_v30 = vand.u32 4294901760, %v1085_v27  ;;  %v1636_v41 = vpack.c.bf16 %v1085_v27, %v1073_v16  ;;  %v1069_v43 = vsub.f32 %v1067_v19, %v1068_v32  ;;  %v1076_v51 = vand.u32 4294901760, %v1075_v40 }
 0x15a   : > { %1619 = vmatprep.subr.bf16.mxu1 %v1618_v38  ;;  %v1080_v44 = vand.u32 4294901760, %v1079_v36  ;;  %v1634_v45 = vpack.c.bf16 %v1079_v36, %v1067_v19 }
 0x15b   : > { %v1087_v47 = vsub.f32 %v1085_v27, %v1086_v30  ;;  %1621 = vmatpush1.bf16.msra.mxu1 %v1620_v34  ;;  %v1652_v48 = vpack.c.bf16 %v1086_v30, %v1074_v23  ;;  %v1070_v53 = vand.u32 4294901760, %v1069_v43 }
 0x15c   : > { %1623 = vmatprep.subr.bf16.mxu1 %v1622_v39  ;;  %v1081_v49 = vsub.f32 %v1079_v36, %v1080_v44  ;;  %v1650_v50 = vpack.c.bf16 %v1080_v44, %v1068_v32 }
 0x15d   : > { %v1088_v52 = vand.u32 4294901760, %v1087_v47 }
 0x15e   : > { %1036 = vmatmul.mubr.f32.vlgmr.msra.gmra.mrb[8].mxu1 %v1035_v42  ;;  %v1082_v54 = vand.u32 4294901760, %v1081_v49 }
 0x15f   : > { %1625 = vmatpush1.bf16.msra.mxu1 %v1624_v35  ;;  %v1628_v55 = vpack.c.bf16 %v1088_v52, %v1076_v51  ;;  %1146 = vmatprep.mubr.f32.mxu1 %v1880_v2 }
 0x160   : > { %v1626_v56 = vpack.c.bf16 %v1082_v54, %v1070_v53 }
 0x162   : > { %1627 = vmatprep.subr.bf16.mxu1 %v1626_v56 }
 0x163   : > { %1629 = vmatpush1.bf16.msra.mxu1 %v1628_v55 }
 0x164   : > { %1631 = vmatprep.subr.bf16.mxu1 %v1630_v18 }
 0x166   : > { %1148 = vmatmul.mubr.f32.vlgmr.msra.gmra.mrb[8].mxu1 %v2087_v29 }
 0x167   : > { %1633 = vmatpush1.bf16.msra.mxu1 %v1632_v22  ;;  %1234 = vmatprep.mubr.f32.mxu1 %v1880_v2 }
 0x168   : > { %1635 = vmatprep.subr.bf16.mxu1 %v1634_v45 }
 0x16b   : > { %1637 = vmatpush1.bf16.msra.mxu1 %v1636_v41 }
 0x16c   : > { %1639 = vmatprep.subr.bf16.mxu1 %v2107_v4 }
 0x16e   : > { %1237 = vmatmul.mubr.f32.vlgmr.msra.gmra.mrb[8].mxu1 %v2090_v37  ;;  %v952_v37 = vpop.permute.xlu0 %951 }
 0x16f   : > { %1641 = vmatpush1.bf16.msra.mxu1 %v2103_v61  ;;  %1315 = vmatprep.mubr.f32.mxu1 %v1880_v2 }
 0x170   : > { %1643 = vmatprep.subr.bf16.mxu1 %v1618_v38 }
 0x173   : > { %1645 = vmatpush1.bf16.msra.mxu1 %v1620_v34 }
 0x174   : > { %1647 = vmatprep.subr.bf16.mxu1 %v1646_v26 }
 0x176   : > { %1319 = vmatmul.mubr.f32.vlgmr.msra.gmra.mrb[8].mxu1 %v1033_v46 }
 0x177   : > { %1649 = vmatpush1.bf16.msra.mxu1 %v1648_v33  ;;  %1413 = vmatprep.mubr.f32.mxu1 %v1880_v2 }
 0x178   : > { %1651 = vmatprep.subr.bf16.mxu1 %v1650_v50 }
 0x17b   : > { %1653 = vmatpush1.bf16.msra.mxu1 %v1652_v48 }
 0x17c   : > { %1655 = vmatprep.subr.bf16.mxu1 %v2107_v4 }
 0x17e   : > { %1415 = vmatmul.mubr.f32.vlgmr.msra.gmra.mrb[8].mxu1 %v2087_v29 }
 0x17f   : > { %1657 = vmatpush1.bf16.msra.mxu1 %v2103_v61  ;;  %1493 = vmatprep.mubr.f32.mxu1 %v1880_v2 }
 0x180   : > { %1659 = vmatprep.subr.bf16.mxu1 %v1618_v38 }
 0x183   : > { %1661 = vmatpush1.bf16.msra.mxu1 %v1620_v34 }
 0x186   : > { %1495 = vmatmul.mubr.f32.vlgmr.msra.gmra.mrb[8].mxu1 %v2087_v29 }
 0x259   : > { %v1496_v46 = vpop.f32.mrb[8].mxu1 }
 0x25a   : > { %v1680_v57 = vadd.f32 %v1496_v46, %v952_v37  ;;  %v1498_v58 = vpop.f32.mrb[9].mxu1 }
 0x25b   : > { %v1681_v59 = vadd.f32 %v1498_v58, %v952_v37 }
 0x25d   : > { %v1503_v60 = vcombine.low %v1680_v57, %v1681_v59 }
 0x25f   : > { %1505 = vst [vmem:[%s242_s27] sm:$0xff] %v1503_v60 }
 0x260   : > { %1813 = shalt.err (!%p1810_p5)
}
 0x261   : > { %s1814_s14 = scalar_lea.hbm %s2137_s9, 128  ;;  %s1818_s17 = scalar_lea.hbm %s2189_s5, 256 }
 0x262   : > { %p1815_p6 = scmp.ne.s32.totalorder %s2137_s9, %s1814_s14  ;;  %p1819_p10 = scmp.lt.u32.totalorder %s2137_s9, %s2189_s5 }
 0x263   : > { %p1820_p11 = scmp.lt.u32.totalorder %s1818_s17, %s1814_s14  ;;  %p1822_p13 = scmp.lt.u32.totalorder %s1814_s14, %s2137_s9 }
 0x264   : > { %p1816_p7 = pnand %p1815_p6, %p1953_p4 }
 0x265   : > { %p1821_p12 = por %p1820_p11, %p1819_p10 }
 0x266   : > { %p1817_p9 = pneg %p1816_p7 }
 0x267   : > { %p1823_p0 = por %p1822_p13, %p1821_p12 }
 0x269   : > { %p1824_p1 = pnand %p1823_p0, %p1817_p9 }
 0x26b   : > { %1827 = shalt.err (!%p1824_p1)
}
 0x26c   : > { %1724 = dma.vmem_to_hbm [thread:$0]  (%p1953_p4), %s2139_s29, 128, %s2137_s9, %s1507_s10  }
 0x26d PF: > { %p1730_p2 = scmp.ge.s32.totalorder %s1878_s23, 2  ;;  %s1535_s27 = sand.u32 1, %s1858_s18  }
 0x26e   : > { %s1536_s7 = scalar_lea.sflag [#allocation3], %s1535_s27 }
 0x26f   : > { %p1727_p3 = pnand %p1730_p2, %p1960_p8 }
 0x271   : > { %1853 = dma.done.wait (!%p1727_p3), %s1536_s7, 128  }
 0x272   : > { %1855 = vsyncadd (!%p1727_p3), %s1536_s7, 4294967168  ;;  %s18_s23 = sadd.s32 1, %s1878_s23   ;;  %s2192_s18 = smov %s1862_s19 }
 0x273   : > { %p15_p5 = scmp.ge.s32.totalorder %s18_s23, 4   ;;  %s2193_s19 = smov %s1866_s20 }
 0x274   : > { %s2194_s20 = smov %s1966_s6  ;;  %s2195_s21 = smov %s1874_s22 }
 0x275   : > { %s2196_s22 = smov %s2198_s26  ;;  %17 = sbr.rel (!%p15_p5) target bundleno = 4 (0x4), region = 75 }
 0x27c   :  { %1541 = vsyncpa [#allocation3], 1 }
 0x27d   :  { %1543 = vsyncpa [#allocation3 + $0x1], 1 }

</bundles_post_ra>
